<compile_context>
chip_gen: v6e
topology: v6e:2x2x1
jax: 0.10.0
libtpu: 0.0.40
codegen_flags: <defaults>
</compile_context>

<pallas_src>
import functools

import jax
import jax.numpy as jnp
from jax import lax
from jax.experimental import pallas as pl
from jax.experimental.pallas import tpu as pltpu

MIN_MARGIN = 50.0
MAX_MARGIN = 120.0


def _vmem_budget():
    """Scoped-VMEM budget for the kernel, gated on the TPU generation."""
    cap = 128 * 1024 * 1024
    try:
        cap = int(pltpu.get_tpu_info().vmem_capacity_bytes)
    except Exception:
        pass
    # ~half of physical VMEM: 64 MiB on v5e/v6e (128 MiB), 32 MiB on v7x (64 MiB).
    return int(min(96 * 1024 * 1024, max(16 * 1024 * 1024, cap // 2)))


def _divisor_multiple_of(n, unit, cap):
    """Largest divisor of n that is a multiple of `unit` and <= cap (or None)."""
    cap = (min(cap, n) // unit) * unit
    for cand in range(cap, unit - 1, -unit):
        if n % cand == 0:
            return cand
    return None


def _choose_tiles(bp, n, elem_bytes, vmem_budget):
    """Pick (tb batches, tm rows, tc cols) per block.

    Per-step VMEM ~= tb*tm*tc * (2*elem_bytes [double-buffered sim] + 8 [two f32
    accumulators]).  Tiles either divide n exactly or span the full dim, so no
    padding pass is needed in the wrapper.
    """
    per_elem = 2 * elem_bytes + 8
    max_elems = max(8 * 128, (vmem_budget - (2 << 20)) // per_elem)
    min_elems = max(8 * 128, (1 << 20) // elem_bytes)   # ~1 MiB of sim per step

    # Column tile: lane-aligned divisor of n (finest triangular-skip granularity
    # that still gives ~square, >=min_elems blocks), else the full extent.
    if n % 128 == 0 and n > 128:
        side = int(min_elems ** 0.5)
        tc = _divisor_multiple_of(n, 128, max(128, side)) or 128
    else:
        tc = n

    # Row tile: multiple of 8 dividing n; prefer several row blocks (triangular
    # skipping + pipeline depth) while a block still carries >= min_elems.
    if n % 8 == 0 and n > 8:
        tm = _divisor_multiple_of(n, 8, max(8, max_elems // tc)) or 8
        for denom in (8, 4, 2):
            cand = _divisor_multiple_of(n, 8, max(8, n // denom))
            if cand is not None and cand <= tm and cand * tc >= min_elems:
                tm = cand
                break
    else:
        tm = n
        # TODO(synk): very large n that is not a multiple of 8 would need a
        # padded-row fallback to fit VMEM; not implemented (rare in practice).

    # Batch blocking: only batch up tiny blocks, and keep >= 2 batch blocks so
    # the "parallel" axis can feed both v7x TensorCores.
    tb = 1
    if bp > 1 and tm * tc < min_elems:
        cap = max(1, min(bp // 2, max_elems // max(1, tm * tc)))
        for d in range(cap, 0, -1):
            if bp % d == 0:
                tb = d
                break
    return tb, tm, tc


def _contrastive_kernel(r_ref, c_ref, sim_ref, trow_ref, tcol_ref, out_ref,
                        acc1, acc2, *, tm, tc):
    """One grid step: TB batches x one (TM x TC) upper-triangular block.

    r_ref/c_ref : (P,) i32 SMEM    scalar-prefetched block schedule
    sim_ref     : (TB, TM, TC)     similarity tile (input dtype, upcast here)
    trow_ref    : (TB, 1,  TC)     targets along lanes
    tcol_ref    : (TB, TM, 1)      targets along sublanes (no in-kernel transpose)
    out_ref     : (TB, 8, 128) f32 row 0 = num1 per batch, row 1 = num2 per batch
    acc1/acc2   : (TB, TM, TC) f32 lane-dense partial sums across the schedule
    """
    p = pl.program_id(1)

    @pl.when(p == 0)
    def _init():
        acc1[...] = jnp.zeros_like(acc1)
        acc2[...] = jnp.zeros_like(acc2)

    sim = sim_ref[...].astype(jnp.float32)                 # (TB, TM, TC)
    same = tcol_ref[...] == trow_ref[...]                  # (TB, TM, TC) bool

    # Strict upper triangle of this block:
    #   j_global > i_global  <=>  (j_loc - i_loc) > r*TM - c*TC
    thr = r_ref[p] * tm - c_ref[p] * tc
    diff = (lax.broadcasted_iota(jnp.int32, (tm, tc), 1)
            - lax.broadcasted_iota(jnp.int32, (tm, tc), 0))
    upper = diff > thr

    # Fused hinge: positives use relu(sim-50)^2, negatives relu(120-sim)^2.
    s = jnp.where(same, sim - MIN_MARGIN, MAX_MARGIN - sim)
    d = jnp.maximum(s, 0.0)
    sq = jnp.where(upper, d * d, 0.0)

    acc1[...] += jnp.where(same, sq, 0.0)
    acc2[...] += jnp.where(same, 0.0, sq)

    @pl.when(p == pl.num_programs(1) - 1)
    def _finalize():
        num1 = jnp.sum(jnp.sum(acc1[...], axis=2, keepdims=True), axis=1, keepdims=True)
        num2 = jnp.sum(jnp.sum(acc2[...], axis=2, keepdims=True), axis=1, keepdims=True)
        row = lax.broadcasted_iota(jnp.int32, out_ref.shape, 1)
        out_ref[...] = jnp.where(row == 0, num1, jnp.where(row == 1, num2, 0.0))


def contrastive_loss(sim_mat, targets, M=None, *, tiles=None, vmem_budget=None):
    """JAX/Pallas equivalent of ContrastiveLoss.forward(sim_mat, targets, M)."""
    bp, n, n2 = sim_mat.shape
    assert n == n2, "sim_mat must be (bp, n, n)"
    # M accepted for signature parity; it does not affect the returned loss.

    tgt = (targets.astype(jnp.int32)
           if jnp.issubdtype(targets.dtype, jnp.integer)
           else targets.astype(jnp.float32))

    budget = _vmem_budget() if vmem_budget is None else int(vmem_budget)
    elem_bytes = jnp.dtype(sim_mat.dtype).itemsize
    tb, tm, tc = _choose_tiles(bp, n, elem_bytes, budget) if tiles is None else tiles

    # Host-side schedule of (row-block, col-block) pairs that intersect the
    # strict upper triangle; strictly-lower blocks are never visited.
    nrb, ncb = n // tm, n // tc
    pairs = [(r, c) for r in range(nrb) for c in range(ncb)
             if c * tc + tc - 1 > r * tm]
    r_sched = jnp.asarray([p[0] for p in pairs], dtype=jnp.int32)
    c_sched = jnp.asarray([p[1] for p in pairs], dtype=jnp.int32)
    num_pairs = len(pairs)

    t_row = tgt.reshape(bp, 1, n)     # targets along lanes
    t_col = tgt.reshape(bp, n, 1)     # targets along sublanes

    kernel = functools.partial(_contrastive_kernel, tm=tm, tc=tc)

    out = pl.pallas_call(
        kernel,
        out_shape=jax.ShapeDtypeStruct((bp, 8, 128), jnp.float32),
        grid_spec=pltpu.PrefetchScalarGridSpec(
            num_scalar_prefetch=2,
            grid=(bp // tb, num_pairs),
            in_specs=[
                pl.BlockSpec((tb, tm, tc), lambda b, p, rs, cs: (b, rs[p], cs[p])),
                pl.BlockSpec((tb, 1, tc), lambda b, p, rs, cs: (b, 0, cs[p])),
                pl.BlockSpec((tb, tm, 1), lambda b, p, rs, cs: (b, rs[p], 0)),
            ],
            out_specs=pl.BlockSpec((tb, 8, 128), lambda b, p, rs, cs: (b, 0, 0)),
            scratch_shapes=[
                pltpu.VMEM((tb, tm, tc), jnp.float32),
                pltpu.VMEM((tb, tm, tc), jnp.float32),
            ],
        ),
        compiler_params=pltpu.CompilerParams(
            dimension_semantics=("parallel", "arbitrary"),
            vmem_limit_bytes=budget,
        ),
    )(r_sched, c_sched, sim_mat, t_row, t_col)

    num1 = out[:, 0, 0]      # per-batch sum(label     * relu(sim-50)^2)  over i<j
    num2 = out[:, 1, 0]      # per-batch sum((1-label) * relu(120-sim)^2) over i<j

    # Pair counts from the tiny targets array (XLA fuses the broadcast-compare
    # into the reduction; no n x n slab hits HBM).
    same_cnt = jnp.sum((tgt[:, :, None] == tgt[:, None, :]).astype(jnp.int32),
                       axis=(1, 2))
    den1 = 0.5 * (same_cnt - n).astype(jnp.float32)          # positive (i<j) pairs
    den2 = 0.5 * n * (n - 1) - den1                          # negative (i<j) pairs
    # NOTE: a batch with no positive (or no negative) pair yields 0/0 = NaN,
    # matching the PyTorch module's behavior.
    loss1 = jnp.sum(num1 / den1)
    loss2 = jnp.sum(num2 / den2)
    return (loss1 + loss2) / bp


def _reference_loss(sim_mat, targets):
    """Pure-JAX reference mirroring the torch code."""
    bp, n, _ = sim_mat.shape
    label = (targets[:, :, None] == targets[:, None, :]).astype(jnp.float32)
    iu, ju = jnp.triu_indices(n, k=1)
    sim_v = sim_mat[:, iu, ju]
    label_v = label[:, iu, ju]
    loss1 = jnp.sum(label_v * jnp.maximum(sim_v - MIN_MARGIN, 0.0) ** 2, 1) / jnp.sum(
        label_v, 1
    )
    loss2 = jnp.sum(
        (1.0 - label_v) * jnp.maximum(MAX_MARGIN - sim_v, 0.0) ** 2, 1
    ) / jnp.sum(1.0 - label_v, 1)
    return jnp.sum(loss1) / bp + jnp.sum(loss2) / bp


if __name__ == "__main__":
    key = jax.random.PRNGKey(0)
    k1, k2, k3 = jax.random.split(key, 3)
    dim = 4

    # Config A: tiny n -> single full-extent block, grid (2, 1).
    bp, n = 2, 8
    sim_a = jax.random.uniform(k1, (bp, n, n), dtype=jnp.float32,
                               minval=0.0, maxval=150.0)
    tgt_a = (jnp.arange(bp * n, dtype=jnp.int32).reshape(bp, n)) % 3
    M_a = jnp.broadcast_to(jnp.eye(dim, dtype=jnp.float32), (bp, dim, dim))
    loss_a = jax.block_until_ready(contrastive_loss(sim_a, tgt_a, M_a))
    ref_a = _reference_loss(sim_a, tgt_a)
    assert jnp.allclose(loss_a, ref_a, rtol=1e-5, atol=1e-4), (loss_a, ref_a)

    # Config B: forced (tb, tm, tc) = (1, 64, 128) -> 4x2 block grid, only 6 of 8
    # blocks scheduled (strictly-lower blocks skipped), accumulators carried
    # across the scalar-prefetched upper-triangular schedule.
    bp2, n2 = 2, 256
    sim_b = jax.random.uniform(k2, (bp2, n2, n2), dtype=jnp.float32,
                               minval=0.0, maxval=150.0)
    tgt_b = (jnp.arange(bp2 * n2, dtype=jnp.int32).reshape(bp2, n2)) % 5
    M_b = jnp.broadcast_to(jnp.eye(dim, dtype=jnp.float32), (bp2, dim, dim))
    loss_b = jax.block_until_ready(
        contrastive_loss(sim_b, tgt_b, M_b, tiles=(1, 64, 128)))
    ref_b = _reference_loss(sim_b, tgt_b)
    assert jnp.allclose(loss_b, ref_b, rtol=1e-3, atol=1e-3), (loss_b, ref_b)

    # Config C: default heuristic picks batch blocking (tb = 2), grid (2, 1).
    bp3, n3 = 4, 16
    sim_c = jax.random.uniform(k3, (bp3, n3, n3), dtype=jnp.float32,
                               minval=0.0, maxval=150.0)
    tgt_c = (jnp.arange(bp3 * n3, dtype=jnp.int32).reshape(bp3, n3)) % 3
    M_c = jnp.broadcast_to(jnp.eye(dim, dtype=jnp.float32), (bp3, dim, dim))
    loss_c = jax.block_until_ready(contrastive_loss(sim_c, tgt_c, M_c))
    ref_c = _reference_loss(sim_c, tgt_c)
    assert jnp.allclose(loss_c, ref_c, rtol=1e-5, atol=1e-4), (loss_c, ref_c)

    print("KERNEL_OK")
</pallas_src>

<mosaic_0001>
module attributes {stable_mosaic.version = 11 : i64} {
  func.func @_contrastive_kernel(%arg0: i32, %arg1: i32, %arg2: memref<1xi32, #tpu.memory_space<smem>>, %arg3: memref<1xi32, #tpu.memory_space<smem>>, %arg4: memref<1x8x8xf32, #tpu.memory_space<vmem>>, %arg5: memref<1x1x8xi32, #tpu.memory_space<vmem>>, %arg6: memref<1x8x1xi32, #tpu.memory_space<vmem>>, %arg7: memref<1x8x128xf32, #tpu.memory_space<vmem>>, %arg8: memref<1x8x8xf32, #tpu.memory_space<vmem>>, %arg9: memref<1x8x8xf32, #tpu.memory_space<vmem>>) attributes {dimension_semantics = [#tpu.dimension_semantics<parallel>, #tpu.dimension_semantics<arbitrary>], iteration_bounds = array<i64: 2, 1>, scalar_prefetch = 2 : i64, scratch_operands = 2 : i64, tpu.core_type = #tpu.core_type<tc>, window_params = [{transform_indices = @transform_0, window_bounds = array<i64: 1, 8, 8>}, {transform_indices = @transform_1, window_bounds = array<i64: 1, 1, 8>}, {transform_indices = @transform_2, window_bounds = array<i64: 1, 8, 1>}, {transform_indices = @transform_3, window_bounds = array<i64: 1, 8, 128>}]} {
    %c0_i32 = arith.constant 0 : i32
    %0 = arith.cmpi eq, %arg1, %c0_i32 : i32
    %1 = arith.extui %0 : i1 to i32
    %c0_i32_0 = arith.constant 0 : i32
    %2 = arith.cmpi ne, %1, %c0_i32_0 : i32
    scf.if %2 {
      %cst_29 = arith.constant 0.000000e+00 : f32
      %45 = vector.broadcast %cst_29 : f32 to vector<1x8x8xf32>
      %c0_30 = arith.constant 0 : index
      %c0_31 = arith.constant 0 : index
      %c0_32 = arith.constant 0 : index
      %46 = vector.load %arg8[%c0_30, %c0_31, %c0_32] : memref<1x8x8xf32, #tpu.memory_space<vmem>>, vector<1x8x8xf32>
      tpu.vector_store %arg8[%c0_30, %c0_31, %c0_32], %45 {strides = array<i32>} : memref<1x8x8xf32, #tpu.memory_space<vmem>>, vector<1x8x8xf32>,
      %cst_33 = arith.constant 0.000000e+00 : f32
      %47 = vector.broadcast %cst_33 : f32 to vector<1x8x8xf32>
      %c0_34 = arith.constant 0 : index
      %c0_35 = arith.constant 0 : index
      %c0_36 = arith.constant 0 : index
      %48 = vector.load %arg9[%c0_34, %c0_35, %c0_36] : memref<1x8x8xf32, #tpu.memory_space<vmem>>, vector<1x8x8xf32>
      tpu.vector_store %arg9[%c0_34, %c0_35, %c0_36], %47 {strides = array<i32>} : memref<1x8x8xf32, #tpu.memory_space<vmem>>, vector<1x8x8xf32>,
    } else {
    }
    %c0 = arith.constant 0 : index
    %c0_1 = arith.constant 0 : index
    %c0_2 = arith.constant 0 : index
    %3 = vector.load %arg4[%c0, %c0_1, %c0_2] : memref<1x8x8xf32, #tpu.memory_space<vmem>>, vector<1x8x8xf32>
    %c0_3 = arith.constant 0 : index
    %c0_4 = arith.constant 0 : index
    %c0_5 = arith.constant 0 : index
    %4 = vector.load %arg6[%c0_3, %c0_4, %c0_5] : memref<1x8x1xi32, #tpu.memory_space<vmem>>, vector<1x8x1xi32>
    %c0_6 = arith.constant 0 : index
    %c0_7 = arith.constant 0 : index
    %c0_8 = arith.constant 0 : index
    %5 = vector.load %arg5[%c0_6, %c0_7, %c0_8] : memref<1x1x8xi32, #tpu.memory_space<vmem>>, vector<1x1x8xi32>
    %6 = vector.broadcast %4 : vector<1x8x1xi32> to vector<1x8x8xi32>
    %7 = vector.broadcast %5 : vector<1x1x8xi32> to vector<1x8x8xi32>
    %8 = arith.cmpi eq, %6, %7 : vector<1x8x8xi32>
    %9 = arith.index_cast %arg1 : i32 to index
    %10 = memref.load %arg2[%9] : memref<1xi32, #tpu.memory_space<smem>>
    %c8_i32 = arith.constant 8 : i32
    %11 = arith.muli %10, %c8_i32 : i32
    %12 = arith.index_cast %arg1 : i32 to index
    %13 = memref.load %arg3[%12] : memref<1xi32, #tpu.memory_space<smem>>
    %c8_i32_9 = arith.constant 8 : i32
    %14 = arith.muli %13, %c8_i32_9 : i32
    %15 = arith.subi %11, %14 : i32
    %16 = tpu.iota {dimensions = array<i32: 1>} : vector<8x8xi32>
    %17 = tpu.iota {dimensions = array<i32: 0>} : vector<8x8xi32>
    %18 = arith.subi %16, %17 : vector<8x8xi32>
    %19 = vector.broadcast %15 : i32 to vector<8x8xi32>
    %20 = arith.cmpi sgt, %18, %19 : vector<8x8xi32>
    %cst = arith.constant 5.000000e+01 : f32
    %21 = vector.broadcast %cst : f32 to vector<1x8x8xf32>
    %22 = arith.subf %3, %21 : vector<1x8x8xf32>
    %cst_10 = arith.constant 1.200000e+02 : f32
    %23 = vector.broadcast %cst_10 : f32 to vector<1x8x8xf32>
    %24 = arith.subf %23, %3 : vector<1x8x8xf32>
    %25 = arith.select %8, %22, %24 : vector<1x8x8xi1>, vector<1x8x8xf32>
    %cst_11 = arith.constant 0.000000e+00 : f32
    %26 = vector.broadcast %cst_11 : f32 to vector<1x8x8xf32>
    %27 = arith.maximumf %25, %26 : vector<1x8x8xf32>
    %28 = arith.mulf %27, %27 : vector<1x8x8xf32>
    %cst_12 = arith.constant 0.000000e+00 : f32
    %29 = vector.shape_cast %20 : vector<8x8xi1> to vector<1x8x8xi1>
    %30 = vector.broadcast %cst_12 : f32 to vector<1x8x8xf32>
    %31 = arith.select %29, %28, %30 : vector<1x8x8xi1>, vector<1x8x8xf32>
    %c0_13 = arith.constant 0 : index
    %c0_14 = arith.constant 0 : index
    %c0_15 = arith.constant 0 : index
    %32 = vector.load %arg8[%c0_13, %c0_14, %c0_15] : memref<1x8x8xf32, #tpu.memory_space<vmem>>, vector<1x8x8xf32>
    %cst_16 = arith.constant 0.000000e+00 : f32
    %33 = vector.broadcast %cst_16 : f32 to vector<1x8x8xf32>
    %34 = arith.select %8, %31, %33 : vector<1x8x8xi1>, vector<1x8x8xf32>
    %35 = arith.addf %32, %34 : vector<1x8x8xf32>
    %c0_17 = arith.constant 0 : index
    %c0_18 = arith.constant 0 : index
    %c0_19 = arith.constant 0 : index
    %36 = vector.load %arg8[%c0_17, %c0_18, %c0_19] : memref<1x8x8xf32, #tpu.memory_space<vmem>>, vector<1x8x8xf32>
    tpu.vector_store %arg8[%c0_17, %c0_18, %c0_19], %35 {strides = array<i32>} : memref<1x8x8xf32, #tpu.memory_space<vmem>>, vector<1x8x8xf32>,
    %c0_20 = arith.constant 0 : index
    %c0_21 = arith.constant 0 : index
    %c0_22 = arith.constant 0 : index
    %37 = vector.load %arg9[%c0_20, %c0_21, %c0_22] : memref<1x8x8xf32, #tpu.memory_space<vmem>>, vector<1x8x8xf32>
    %cst_23 = arith.constant 0.000000e+00 : f32
    %38 = vector.broadcast %cst_23 : f32 to vector<1x8x8xf32>
    %39 = arith.select %8, %38, %31 : vector<1x8x8xi1>, vector<1x8x8xf32>
    %40 = arith.addf %37, %39 : vector<1x8x8xf32>
    %c0_24 = arith.constant 0 : index
    %c0_25 = arith.constant 0 : index
    %c0_26 = arith.constant 0 : index
    %41 = vector.load %arg9[%c0_24, %c0_25, %c0_26] : memref<1x8x8xf32, #tpu.memory_space<vmem>>, vector<1x8x8xf32>
    tpu.vector_store %arg9[%c0_24, %c0_25, %c0_26], %40 {strides = array<i32>} : memref<1x8x8xf32, #tpu.memory_space<vmem>>, vector<1x8x8xf32>,
    %c0_i32_27 = arith.constant 0 : i32
    %42 = arith.cmpi eq, %arg1, %c0_i32_27 : i32
    %43 = arith.extui %42 : i1 to i32
    %c0_i32_28 = arith.constant 0 : i32
    %44 = arith.cmpi ne, %43, %c0_i32_28 : i32
    scf.if %44 {
      %c0_29 = arith.constant 0 : index
      %c0_30 = arith.constant 0 : index
      %c0_31 = arith.constant 0 : index
      %45 = vector.load %arg8[%c0_29, %c0_30, %c0_31] : memref<1x8x8xf32, #tpu.memory_space<vmem>>, vector<1x8x8xf32>
      %cst_32 = arith.constant dense<0.000000e+00> : vector<1x8xf32>
      %46 = vector.multi_reduction <add>, %45, %cst_32 [2] : vector<1x8x8xf32> to vector<1x8xf32>
      %47 = vector.shape_cast %46 : vector<1x8xf32> to vector<1x8x1xf32>
      %cst_33 = arith.constant dense<0.000000e+00> : vector<1x1xf32>
      %48 = vector.multi_reduction <add>, %47, %cst_33 [1] : vector<1x8x1xf32> to vector<1x1xf32>
      %49 = vector.shape_cast %48 : vector<1x1xf32> to vector<1x1x1xf32>
      %c0_34 = arith.constant 0 : index
      %c0_35 = arith.constant 0 : index
      %c0_36 = arith.constant 0 : index
      %50 = vector.load %arg9[%c0_34, %c0_35, %c0_36] : memref<1x8x8xf32, #tpu.memory_space<vmem>>, vector<1x8x8xf32>
      %cst_37 = arith.constant dense<0.000000e+00> : vector<1x8xf32>
      %51 = vector.multi_reduction <add>, %50, %cst_37 [2] : vector<1x8x8xf32> to vector<1x8xf32>
      %52 = vector.shape_cast %51 : vector<1x8xf32> to vector<1x8x1xf32>
      %cst_38 = arith.constant dense<0.000000e+00> : vector<1x1xf32>
      %53 = vector.multi_reduction <add>, %52, %cst_38 [1] : vector<1x8x1xf32> to vector<1x1xf32>
      %54 = vector.shape_cast %53 : vector<1x1xf32> to vector<1x1x1xf32>
      %55 = tpu.iota {dimensions = array<i32: 1>} : vector<1x8x128xi32>
      %c0_i32_39 = arith.constant 0 : i32
      %56 = vector.broadcast %c0_i32_39 : i32 to vector<1x8x128xi32>
      %57 = arith.cmpi eq, %55, %56 : vector<1x8x128xi32>
      %c1_i32 = arith.constant 1 : i32
      %58 = vector.broadcast %c1_i32 : i32 to vector<1x8x128xi32>
      %59 = arith.cmpi eq, %55, %58 : vector<1x8x128xi32>
      %cst_40 = arith.constant 0.000000e+00 : f32
      %60 = vector.shape_cast %54 : vector<1x1x1xf32> to vector<1x1x1xf32>
      %61 = vector.broadcast %60 : vector<1x1x1xf32> to vector<1x8x128xf32>
      %62 = vector.broadcast %cst_40 : f32 to vector<1x8x128xf32>
      %63 = arith.select %59, %61, %62 : vector<1x8x128xi1>, vector<1x8x128xf32>
      %64 = vector.shape_cast %49 : vector<1x1x1xf32> to vector<1x1x1xf32>
      %65 = vector.broadcast %64 : vector<1x1x1xf32> to vector<1x8x128xf32>
      %66 = arith.select %57, %65, %63 : vector<1x8x128xi1>, vector<1x8x128xf32>
      %c0_41 = arith.constant 0 : index
      %c0_42 = arith.constant 0 : index
      %c0_43 = arith.constant 0 : index
      %67 = vector.load %arg7[%c0_41, %c0_42, %c0_43] : memref<1x8x128xf32, #tpu.memory_space<vmem>>, vector<1x8x128xf32>
      tpu.vector_store %arg7[%c0_41, %c0_42, %c0_43], %66 {strides = array<i32>} : memref<1x8x128xf32, #tpu.memory_space<vmem>>, vector<1x8x128xf32>,
    } else {
    }
    return
  }
  func.func @transform_0(%arg0: i32, %arg1: i32, %arg2: memref<1xi32, #tpu.memory_space<smem>>, %arg3: memref<1xi32, #tpu.memory_space<smem>>) -> (i32, i32, i32) {
    %0 = arith.index_cast %arg1 : i32 to index
    %1 = memref.load %arg2[%0] : memref<1xi32, #tpu.memory_space<smem>>
    %2 = arith.index_cast %arg1 : i32 to index
    %3 = memref.load %arg3[%2] : memref<1xi32, #tpu.memory_space<smem>>
    %c0_i32 = arith.constant 0 : i32
    return %arg0, %1, %3 : i32, i32, i32
  }
  func.func @transform_1(%arg0: i32, %arg1: i32, %arg2: memref<1xi32, #tpu.memory_space<smem>>, %arg3: memref<1xi32, #tpu.memory_space<smem>>) -> (i32, i32, i32) {
    %0 = arith.index_cast %arg1 : i32 to index
    %1 = memref.load %arg3[%0] : memref<1xi32, #tpu.memory_space<smem>>
    %c0_i32 = arith.constant 0 : i32
    %c0_i32_0 = arith.constant 0 : i32
    return %arg0, %c0_i32, %1 : i32, i32, i32
  }
  func.func @transform_2(%arg0: i32, %arg1: i32, %arg2: memref<1xi32, #tpu.memory_space<smem>>, %arg3: memref<1xi32, #tpu.memory_space<smem>>) -> (i32, i32, i32) {
    %0 = arith.index_cast %arg1 : i32 to index
    %1 = memref.load %arg2[%0] : memref<1xi32, #tpu.memory_space<smem>>
    %c0_i32 = arith.constant 0 : i32
    %c0_i32_0 = arith.constant 0 : i32
    return %arg0, %1, %c0_i32 : i32, i32, i32
  }
  func.func @transform_3(%arg0: i32, %arg1: i32, %arg2: memref<1xi32, #tpu.memory_space<smem>>, %arg3: memref<1xi32, #tpu.memory_space<smem>>) -> (i32, i32, i32) {
    %c0_i32 = arith.constant 0 : i32
    %c0_i32_0 = arith.constant 0 : i32
    %c0_i32_1 = arith.constant 0 : i32
    return %arg0, %c0_i32, %c0_i32_0 : i32, i32, i32
  }
}

</mosaic_0001>

<bundles_post_ra>
// kernel: tpu_custom_call.1
= control target key start
LH: loop header
LB: loop body
LE: loop exit
PB: predicated region body
PF: predicated region fallthrough
CT: control target
= control target key end

     0   :  { %s785_s0 = inlined_call_operand.<no memory space> [shape: s32[1], index: 0, kind: input, shape index: {}]   ;;  %s786_s1 = inlined_call_operand.<no memory space> [shape: s32[1], index: 1, kind: input, shape index: {}]   ;;  %s787_s2 = inlined_call_operand.vmem [shape: f32[2,8,8], index: 2, kind: input, shape index: {}]   ;;  %s788_s3 = inlined_call_operand.vmem [shape: s32[2,1,8], index: 3, kind: input, shape index: {}]   ;;  %s789_s4 = inlined_call_operand.vmem [shape: s32[2,8,1], index: 4, kind: input, shape index: {}]   ;;  %s790_s5 = inlined_call_operand.hbm [shape: f32[2,8,128], index: 5, kind: output, shape index: {}]  }
   0x1   :  { %10 = sst [smem:[#allocation5]] %s785_s0 }
   0x2   :  { %11 = sst [smem:[#allocation6]] %s786_s1 }
   0x3   :  { %12 = vsyncpa [#allocation8], 0 }
   0x4   :  { %14 = vsyncpa [#allocation8 + $0x1], 0  ;;  %s663_s22 = smov 0   ;;  %s665_s23 = smov 0  }
   0x5   :  { %s667_s24 = smov 0   ;;  %s669_s25 = smov 0  }
   0x6   :  { %s671_s26 = smov 0   ;;  %s673_s27 = smov 0  }
   0x7 LB: > { %794 = sst [smem:[#allocation10_spill]] %s610_s24  ;;  %s472_s0 = sadd.s32 4294967295, %s622_s27   ;;  %s622_s27 = sphi %s673_s27, %s20_s27   ;;  %s618_s26 = sphi %s671_s26, %s803_s26   ;;  %s614_s25 = sphi %s669_s25, %s802_s25   ;;  %s610_s24 = sphi %s667_s24, %s801_s24   ;;  %s606_s23 = sphi %s665_s23, %s805_s23   ;;  %s602_s22 = sphi %s663_s22, %s804_s22  }
   0x8   : > { %795 = sst [smem:[#allocation11_spill]] %s618_s26  ;;  %s473_s1 = sadd.s32 4294967294, %s622_s27  }
   0x9   : > { %s32_s28 = sadd.s32 1, %s618_s26  ;;  %s133_s29 = sadd.s32 1, %s610_s24 }
   0xa   : > { %p34_p0 = scmp.ge.s32.totalorder %s32_s28, 2  ;;  %p143_p1 = scmp.ne.s32.totalorder %s610_s24, %s606_s23 }
   0xb   : > { %p144_p2 = scmp.eq.s32.totalorder %s472_s0, 1  ;;  %p149_p3 = scmp.ne.s32.totalorder %s606_s23, %s602_s22 }
   0xc   : > { %s807_s28 = smov (%p34_p0, %s32_s28), 0  ;;  %p150_p5 = scmp.eq.s32.totalorder %s473_s1, 1 }
   0xd   : > { %796 = sst [smem:[#allocation12_spill]] %s807_s28  ;;  %p703_p4 = por %p144_p2, %p143_p1 }
   0xe   : > { %s130_s6 = ssub.s32 %s618_s26, %s807_s28  ;;  %p476_p6 = scmp.ge.s32.totalorder %s622_s27, 1 }
   0xf   : > { %p131_p7 = scmp.eq.s32.totalorder %s130_s6, 0  ;;  %p710_p8 = por %p150_p5, %p149_p3 }
  0x10   : > { %p208_p9 = scmp.lt.s32.totalorder %s622_s27, 3 }
  0x11   : > { %s716_s8 = scalar_select %p131_p7, %s610_s24, %s133_s29  }
  0x12   : > { %p209_p10 = pnand %p476_p6, %p208_p9 }
  0x13   : > { %799 = sst [smem:[#allocation13_spill]] %s716_s8  ;;  %p256_p11 = scmp.lt.s32.totalorder (!%p209_p10), %s614_s25, 1 }
  0x14   : > { %212 = sbr.rel (%p209_p10) target bundleno = 342 (0x156), region = 32  ;;  %s718_s9 = sld [smem:[#allocation5]] (!%p209_p10) }
  0x15   : > { %s268_s10 = sld [smem:[#allocation6]] (!%p209_p10)  ;;  %s251_s24 = sand.u32 (!%p209_p10), 1, %s606_s23  }
  0x19   : > { %vm289_vm0 = vcmask 64512   ;;  %v624_v0 = vmov 0   ;;  %v625_v1 = vmov 0.0   ;;  %s257_s11 = scalar_select %p256_p11, %s614_s25, 1  ;;  %v308_v3 = vlaneseq }
  0x1a   : > { %545 = vset.pattern.permute.xlu0 %v624_v0  ;;  %290 = vst.msk [vmem:[#allocation2] sm:$0xff] %vm289_vm0, %v625_v1  ;;  %291 = vst.msk [vmem:[#allocation3] sm:$0xff] %vm289_vm0, %v625_v1  ;;  %p279_p12 = scmp.lt.s32.totalorder %s718_s9, 0  ;;  %s481_s28 = sshll.u32 %s718_s9, 3 }
  0x1b   : > { %p271_p13 = scmp.lt.s32.totalorder %s268_s10, 0  ;;  %s482_s26 = sshll.u32 %s268_s10, 3  ;;  %v309_v5 = vand.u32 127, %v308_v3  ;;  %v311_v6 = vshrl.u32 %v308_v3, 7 }
  0x1c   : > { %s280_s12 = scalar_select %p279_p12, %s718_s9, 0 }
  0x1d   : > { %s272_s13 = scalar_select %p271_p13, %s268_s10, 0  ;;  %v312_v10 = vsub.s32 %v309_v5, %v311_v6  ;;  %vm354_vm3 = vcmp.eq.s32.totalorder %v311_v6, 1  ;;  %vm353_vm4 = vcmp.eq.s32.totalorder %v311_v6, 0 }
  0x1e   : > { %s281_s14 = sadd.s32 %s280_s12, %s257_s11 }
  0x1f   : > { %s479_s15 = sshll.u32 %s281_s14, 3  ;;  %s262_s16 = sadd.s32 %s280_s12, %s272_s13 }
  0x20   : > { %s283_s19 = scalar_lea.vmem %s789_s4, %s479_s15  ;;  %s263_s20 = sadd.s32 %s262_s16, %s257_s11 }
  0x21   : > { %v293_v2 = vld [vmem:[%s283_s19] sm:$0xff]  ;;  %s478_s21 = sshll.u32 %s263_s20, 3  ;;  %s273_s6 = sadd.s32 %s272_s13, %s257_s11  ;;  %v326_v17 = vld [vmem:[#allocation3] sm:$0xff] }
  0x22   : > { %296 = vperm.xlu0 %545, %v293_v2   ;;  %s265_s29 = scalar_lea.vmem %s787_s2, %s478_s21  ;;  %s274_s12 = scalar_lea.vmem %s788_s3, %s273_s6  ;;  %v321_v16 = vld [vmem:[#allocation2] sm:$0xff] }
  0x23   : > { %v292_v4 = vld [vmem:[%s265_s29] sm:$0xff]  ;;  %s307_s14 = ssub.s32 %s481_s28, %s482_s26  ;;  %s477_s26 = sshll.u32 %s251_s24, 3 }
  0x24   : > { %v480_v7 = vld [vmem:[%s274_s12] ss:$0 sm:$0xff]  ;;  %v483_v8 = vadd.f32 -50.0, %v292_v4  ;;  %v316_v9 = vsub.f32 120.0, %v292_v4  ;;  %v313_v12 = vstv %s307_s14  ;;  %s485_s28 = sshll.u32 %s614_s25, 7  ;;  %s253_s8 = scalar_lea.vmem [#allocation7], %s477_s26 }
  0x25   : > { %vm314_vm2 = vcmp.gt.s32.totalorder %v312_v10, %v313_v12  ;;  %s372_s9 = sshll.u32 %s253_s8, 4  ;;  %s745_s13 = scalar_lea.hbm %s790_s5, %s485_s28  ;;  %s373_s9 = int_to_ptr.vmem [resolvable:$true] %s372_s9 }
  0x26   : > { %s359_s15 = scalar_lea.sflag [#allocation8], %s251_s24  ;;  %s546_s16 = scalar_lea.vmem %s373_s9, 128 }
  0x27   : > { %p547_p0 = scmp.ne.s32.totalorder %s373_s9, %s546_s16  ;;  %s626_s25 = smov [#allocation7]  }
  0x28   : > { %s550_s17 = sshll.u32 %s626_s25, 4  ;;  %s551_s17 = int_to_ptr.vmem [resolvable:$false] %s550_s17 }
  0x29   : > { %p548_p1 = pnand %p547_p0, %p703_p4  ;;  %s552_s18 = scalar_lea.vmem %s551_s17, 256 }
  0x2a   : > { %p553_p3 = scmp.lt.s32.totalorder %s373_s9, %s551_s17  ;;  %p554_p5 = scmp.lt.s32.totalorder %s552_s18, %s546_s16 }
  0x2b   : > { %p549_p2 = pneg %p548_p1 }
  0x2c   : > { %p555_p6 = por %p554_p5, %p553_p3 }
  0x2e   : > { %p556_p7 = pnand %p555_p6, %p549_p2 }
  0x9d   : > { %v297_v11 = vpop.permute.xlu0 %296 }
  0x9e   : > { %vm302_vm1 = vcmp.eq.s32.totalorder %v297_v11, %v480_v7 }
  0x9f   : > { %v317_v13 = vsel %vm302_vm1, %v483_v8, %v316_v9 }
  0xa0   : > { %v318_v14 = vmax.f32 %v317_v13, 0.0 }
  0xa2   : > { %v319_v15 = vmul.f32 %v318_v14, %v318_v14 }
  0xa4   : > { %v320_v18 = vsel %vm314_vm2, %v319_v15, 0.0 }
  0xa5   : > { %v322_v19 = vsel %vm302_vm1, %v320_v18, 0.0  ;;  %v327_v20 = vsel %vm302_vm1, 0.0, %v320_v18 }
  0xa6   : > { %v323_v21 = vadd.f32 %v322_v19, %v321_v16  ;;  %v328_v22 = vadd.f32 %v327_v20, %v326_v17 }
  0xa8   : > { %325 = vst.msk [vmem:[#allocation2] sm:$0xff] %vm289_vm0, %v323_v21  ;;  %329 = vst.msk [vmem:[#allocation3] sm:$0xff] %vm289_vm0, %v328_v22 }
  0xaf   : > { %v343_v23 = vld [vmem:[#allocation3] sm:$0xff]  ;;  %v333_v24 = vld [vmem:[#allocation2] sm:$0xff] }
  0xb0   : > { %v344_v25 = vsel %vm289_vm0, %v343_v23, 0.0  ;;  %v334_v26 = vsel %vm289_vm0, %v333_v24, 0.0 }
  0xb1   : > { %345 = vadd.xlane.f32.xlu0 %v344_v25  ;;  %335 = vadd.xlane.f32.xlu1 %v334_v26 }
 0x13a   : > { %v346_v27 = vpop.xlane.xlu0 %345  ;;  %v336_v28 = vpop.xlane.xlu1 %335 }
 0x13b   : > { %v347_v29 = vrot.slane %v346_v27, 4  ;;  %v337_v30 = vrot.slane %v336_v28, 4 }
 0x13d   : > { %v348_v31 = vadd.f32 %v347_v29, %v346_v27  ;;  %v338_v32 = vadd.f32 %v337_v30, %v336_v28 }
 0x13f   : > { %v349_v33 = vrot.slane %v348_v31, 2  ;;  %v339_v34 = vrot.slane %v338_v32, 2 }
 0x141   : > { %v350_v35 = vadd.f32 %v349_v33, %v348_v31  ;;  %v340_v36 = vadd.f32 %v339_v34, %v338_v32 }
 0x143   : > { %v351_v37 = vrot.slane %v350_v35, 1  ;;  %v341_v38 = vrot.slane %v340_v36, 1 }
 0x145   : > { %v352_v39 = vadd.f32 %v351_v37, %v350_v35  ;;  %v342_v40 = vadd.f32 %v341_v38, %v340_v36 }
 0x147   : > { %v355_v41 = vsel %vm354_vm3, %v352_v39, 0.0 }
 0x148   : > { %v356_v42 = vsel %vm353_vm4, %v342_v40, %v355_v41 }
 0x149   : > { %357 = vst [vmem:[%s253_s8] sm:$0xff] %v356_v42 }
 0x14a   : > { %559 = shalt.err (!%p556_p7)
}
 0x14b   : > { %s560_s19 = scalar_lea.hbm %s745_s13, 128  ;;  %s564_s0 = scalar_lea.hbm %s790_s5, 256 }
 0x14c   : > { %p561_p9 = scmp.ne.s32.totalorder %s745_s13, %s560_s19  ;;  %p565_p12 = scmp.lt.s32.totalorder %s745_s13, %s790_s5 }
 0x14d   : > { %p566_p13 = scmp.lt.s32.totalorder %s564_s0, %s560_s19 }
 0x14e   : > { %p562_p10 = pnand %p561_p9, %p703_p4 }
 0x14f   : > { %p567_p0 = por %p566_p13, %p565_p12 }
 0x150   : > { %p563_p11 = pneg %p562_p10 }
 0x152   : > { %p568_p1 = pnand %p567_p0, %p563_p11 }
 0x154   : > { %571 = shalt.err (!%p568_p1)
}
 0x155   : > { %488 = dma.vmem_to_hbm [thread:$0]  (%p703_p4), %s373_s9, 128, %s745_s13, %s359_s15  }
 0x156 PF: > { %p494_p2 = scmp.ge.s32.totalorder %s622_s27, 2  ;;  %s384_s6 = sand.u32 1, %s602_s22  }
 0x157   : > { %s385_s12 = scalar_lea.sflag [#allocation8], %s384_s6 }
 0x158   : > { %p491_p3 = pnand %p494_p2, %p710_p8 }
 0x15a   : > { %p492_p5 = pneg %p491_p3 }
 0x15c   : > { %597 = dma.done.wait (%p492_p5), %s385_s12, 128  }
 0x15d   : > { %599 = vsyncadd (%p492_p5), %s385_s12, 4294967168  ;;  %s20_s27 = sadd.s32 1, %s622_s27   ;;  %s800_s14 = sld [smem:[#allocation10_spill]] }
 0x15e   : > { %p17_p6 = scmp.ge.s32.totalorder %s20_s27, 4   ;;  %s801_s24 = sld [smem:[#allocation13_spill]] }
 0x15f   : > { %s802_s25 = sld [smem:[#allocation11_spill]]  ;;  %s804_s22 = smov %s606_s23 }
 0x160   : > { %s803_s26 = sld [smem:[#allocation12_spill]]  ;;  %19 = sbr.rel (!%p17_p6) target bundleno = 7 (0x7), region = 81 }
 0x163   : > { %s805_s23 = smov %s800_s14 }
 0x165   :  { %390 = vsyncpa [#allocation8], 1 }
 0x166   :  { %392 = vsyncpa [#allocation8 + $0x1], 1 }

</bundles_post_ra>
